<compile_context>
chip_gen: v5e
topology: v5e:2x2
jax: 0.10.0
libtpu: 0.0.40
codegen_flags: <defaults>
</compile_context>

<pallas_src>
import jax
import jax.numpy as jnp
from jax.experimental import pallas as pl
from jax.experimental.pallas import tpu as pltpu

EPS = 1e-12   # BertLayerNorm default


# ----------------------------------------------------------------------------
# tiling helpers
# ----------------------------------------------------------------------------
def _round_up(x, m):
    return (x + m - 1) // m * m


def _vmem_capacity_bytes():
    try:
        return int(pltpu.get_tpu_info().vmem_capacity_bytes)
    except Exception:
        return 64 * 1024 * 1024      # conservative fallback: v7x per-core VMEM


def _tiling(M, row_bytes, pinned_bytes):
    """Pick row-tile TM, padded M and the scoped-VMEM limit.

    row_bytes    ~ per-row VMEM (double-buffered streamed operands + f32 temps)
    pinned_bytes ~ single-buffered VMEM-resident parameters
    """
    cap = _vmem_capacity_bytes()
    budget = min(int(cap * 5) // 8, 48 * 1024 * 1024)   # ~40 MiB v7x, 48 MiB v5e/v6e
    vlimit = min(int(cap * 3) // 4, 64 * 1024 * 1024)   #  48 MiB v7x, 64 MiB v5e/v6e
    avail = max(budget - pinned_bytes, 8 * row_bytes)
    tm_mem = max(8, (avail // row_bytes) // 8 * 8)
    # Target >= 4 grid steps when M allows (pipelining + v7x 2-TC megacore),
    # 256 <= TM <= 512, clamped by the VMEM budget and by M itself.
    tm = max(256, min(512, _round_up(pl.cdiv(M, 4), 8)))
    tm = min(tm, tm_mem, _round_up(M, 8))
    tm = max(tm, 8)
    return tm, _round_up(M, tm), vlimit


def _pinned(shape):
    # Constant index_map => block never changes across grid steps; a single
    # buffer avoids wasting VMEM on a redundant double-buffer copy.
    return pl.BlockSpec(shape, lambda i: (0, 0), pipeline_mode=pl.Buffered(1))


# ----------------------------------------------------------------------------
# in-kernel math helpers
# ----------------------------------------------------------------------------
def _layernorm(x, gamma, beta):
    mu = jnp.mean(x, axis=-1, keepdims=True)
    var = jnp.mean((x - mu) ** 2, axis=-1, keepdims=True)
    return (x - mu) * jax.lax.rsqrt(var + EPS) * gamma + beta


def _erf(x):
    # Abramowitz & Stegun 7.1.26, |error| < 1.5e-7.  Built only from
    # mul/add/div/exp/where so it lowers cleanly in Mosaic (exp -> EUP).
    p = 0.3275911
    a1, a2, a3, a4, a5 = (0.254829592, -0.284496736, 1.421413741,
                          -1.453152027, 1.061405429)
    ax = jnp.abs(x)
    t = 1.0 / (1.0 + p * ax)
    poly = ((((a5 * t + a4) * t + a3) * t + a2) * t + a1) * t
    e = 1.0 - poly * jnp.exp(-ax * ax)
    return jnp.where(x >= 0, e, -e)


def _gelu_erf(x):
    # erf-based gelu == PyTorch ACT2FN['gelu'] (not the tanh approximation).
    return 0.5 * x * (1.0 + _erf(x * 0.7071067811865476))


def _onehot_lookup(ids, table):
    """(TM,1) int32 ids x (V,H) table -> exact (TM,H) f32 embedding rows.

    One-hot MXU matmul instead of a dynamic gather (which may not lower in
    Mosaic); both kernels are HBM-bound so the extra MXU work is free.
    """
    tm = ids.shape[0]
    v = table.shape[0]
    eq = ids == jax.lax.broadcasted_iota(jnp.int32, (tm, v), 1)
    onehot = jnp.where(eq, 1.0, 0.0).astype(table.dtype)
    return jnp.dot(onehot, table, preferred_element_type=jnp.float32)


# ----------------------------------------------------------------------------
# Kernel 1: token path  (word + pos + type, LayerNorm) -- one (TM, H) tile
# ----------------------------------------------------------------------------
def tok_kernel(we_ref, pid_ref, tid_ref, pos_tab_ref, typ_tab_ref,
               g_ref, b_ref, o_ref):
    x = we_ref[...].astype(jnp.float32)
    x = x + _onehot_lookup(pid_ref[...], pos_tab_ref[...])   # position embeds
    x = x + _onehot_lookup(tid_ref[...], typ_tab_ref[...])   # type embeds
    o_ref[...] = _layernorm(x, g_ref[...], b_ref[...]).astype(o_ref.dtype)


def tok_embeddings_pallas(we, pos_ids, type_ids, pos_tab, type_tab, gamma, beta):
    M, H = we.shape
    P, V = pos_tab.shape[0], type_tab.shape[0]
    pinned_bytes = (P + V) * H * pos_tab.dtype.itemsize + 2 * H * 4
    TM, Mp, vlimit = _tiling(M, row_bytes=24 * H + 32, pinned_bytes=pinned_bytes)
    if Mp != M:
        we = jnp.pad(we, ((0, Mp - M), (0, 0)))
        pos_ids = jnp.pad(pos_ids, ((0, Mp - M), (0, 0)))
        type_ids = jnp.pad(type_ids, ((0, Mp - M), (0, 0)))

    row_h = pl.BlockSpec((TM, H), lambda i: (i, 0))
    row_1 = pl.BlockSpec((TM, 1), lambda i: (i, 0))

    out = pl.pallas_call(
        tok_kernel,
        out_shape=jax.ShapeDtypeStruct((Mp, H), jnp.bfloat16),
        grid=(Mp // TM,),
        in_specs=[row_h, row_1, row_1,
                  _pinned((P, H)), _pinned((V, H)),
                  _pinned((1, H)), _pinned((1, H))],
        out_specs=row_h,
        compiler_params=pltpu.CompilerParams(
            dimension_semantics=("parallel",),
            vmem_limit_bytes=vlimit),
    )(we, pos_ids, type_ids, pos_tab, type_tab, gamma, beta)
    return out[:M]


# ----------------------------------------------------------------------------
# Kernel 2: entity path -- one (TM, H) tile
#   fused = ente @ W[:H] + tok_part @ W[H:] + b      (== Linear(cat([e, t])))
#   out   = LN( LN(gelu_erf(fused)) + type_emb )
# ----------------------------------------------------------------------------
def ent_kernel(ente_ref, tok_ref, tid_ref, typ_tab_ref, w_ref, fb_ref,
               g_ref, b_ref, o_ref):
    H = ente_ref.shape[-1]
    g = g_ref[...]
    beta = b_ref[...]
    # Two K=H MXU dots; weight halves sliced off the ref (no concat copy).
    fused = jnp.dot(ente_ref[...], w_ref[:H, :],
                    preferred_element_type=jnp.float32)
    fused = fused + jnp.dot(tok_ref[...], w_ref[H:, :],
                            preferred_element_type=jnp.float32)
    fused = fused + fb_ref[...]
    act = _gelu_erf(fused)
    ln1 = _layernorm(act, g, beta) + _onehot_lookup(tid_ref[...], typ_tab_ref[...])
    o_ref[...] = _layernorm(ln1, g, beta).astype(o_ref.dtype)


def ent_embeddings_pallas(ente, tok_part, type_ids, type_tab, fusion_w,
                          fusion_b, gamma, beta):
    M, H = ente.shape
    V = type_tab.shape[0]
    pinned_bytes = (2 * H * H + V * H) * fusion_w.dtype.itemsize + 3 * H * 4
    TM, Mp, vlimit = _tiling(M, row_bytes=28 * H + 16, pinned_bytes=pinned_bytes)
    if Mp != M:
        pad = ((0, Mp - M), (0, 0))
        ente = jnp.pad(ente, pad)
        tok_part = jnp.pad(tok_part, pad)
        type_ids = jnp.pad(type_ids, pad)

    row_h = pl.BlockSpec((TM, H), lambda i: (i, 0))
    row_1 = pl.BlockSpec((TM, 1), lambda i: (i, 0))

    out = pl.pallas_call(
        ent_kernel,
        out_shape=jax.ShapeDtypeStruct((Mp, H), jnp.bfloat16),
        grid=(Mp // TM,),
        in_specs=[row_h, row_h, row_1,
                  _pinned((V, H)), _pinned((2 * H, H)),
                  _pinned((1, H)), _pinned((1, H)), _pinned((1, H))],
        out_specs=row_h,
        compiler_params=pltpu.CompilerParams(
            dimension_semantics=("parallel",),
            vmem_limit_bytes=vlimit),
    )(ente, tok_part, type_ids, type_tab, fusion_w, fusion_b, gamma, beta)
    return out[:M]


# ----------------------------------------------------------------------------
# Module wrapper
# ----------------------------------------------------------------------------
class TableHybridEmbeddingsPallas:
    def __init__(self, key, vocab_size, ent_vocab_size, max_pos, type_vocab,
                 hidden):
        ks = jax.random.split(key, 8)
        pdt = jnp.bfloat16  # embedding tables / fusion weight stored in bf16

        def init(k, shape):
            return (0.02 * jax.random.normal(k, shape, dtype=jnp.float32)).astype(pdt)

        self.H = hidden
        self.word_emb = init(ks[0], (vocab_size, hidden)).at[0].set(0.0)   # padding_idx=0
        self.ent_emb = init(ks[1], (ent_vocab_size, hidden)).at[0].set(0.0)
        self.pos_emb = init(ks[2], (max_pos, hidden))
        self.type_emb = init(ks[3], (type_vocab, hidden))
        self.mask_emb = init(ks[4], (4, hidden)).at[0].set(0.0)
        # nn.Linear(2H, H): y = x @ W.T + b ; store W.T (2H, H): rows 0:H act
        # on input_ent_embeds, rows H:2H on input_ent_tok_embeds (cat order).
        self.fusion_w = init(ks[5], (2 * hidden, hidden))
        self.fusion_b = 0.02 * jax.random.normal(ks[6], (1, hidden),
                                                 dtype=jnp.float32)
        self.ln_gamma = jnp.ones((1, hidden), jnp.float32)
        self.ln_beta = jnp.zeros((1, hidden), jnp.float32)

    def __call__(self, input_tok, input_tok_type, input_tok_pos,
                 input_ent_tok, input_ent_tok_length, input_ent_mask_type,
                 input_ent, input_ent_type, ent_candidates):
        H = self.H
        B, T = input_tok.shape
        f32 = jnp.float32

        # ----- token path (word gather in XLA; pos/type gather + add + LN in kernel)
        we = jnp.take(self.word_emb, input_tok.reshape(-1), axis=0)
        pos_ids = input_tok_pos.reshape(-1, 1).astype(jnp.int32)
        type_ids = input_tok_type.reshape(-1, 1).astype(jnp.int32)
        tok_out = tok_embeddings_pallas(
            we, pos_ids, type_ids, self.pos_emb, self.type_emb,
            self.ln_gamma, self.ln_beta).reshape(B, T, H)

        # ----- entity path -----
        Bt, Te, L = input_ent_tok.shape
        M = Bt * Te
        # TODO(synk): scalar-prefetch input_ent_tok and DMA-gather word_emb rows
        # in-kernel (word_emb at memory_space=pl.ANY) to avoid any chance of an
        # (M, L, H) HBM intermediate; here we rely on XLA fusing take+sum.
        etw = jnp.take(self.word_emb, input_ent_tok.reshape(M, L), axis=0)
        etw_sum = etw.astype(f32).sum(axis=1)                       # (M, H) f32
        # NOTE: like the PyTorch module, caller must guarantee length >= 1.
        inv_len = (1.0 / input_ent_tok_length.astype(f32)).reshape(M, 1)
        tok_part = etw_sum * inv_len
        memb = jnp.take(self.mask_emb, input_ent_mask_type.reshape(-1),
                        axis=0).astype(f32)
        mflag = input_ent_mask_type.reshape(M, 1) != 0
        tok_part = jnp.where(mflag, memb, tok_part).astype(jnp.bfloat16)

        ente = jnp.take(self.ent_emb, input_ent.reshape(-1), axis=0)      # bf16
        ent_type_ids = input_ent_type.reshape(-1, 1).astype(jnp.int32)

        ent_out = ent_embeddings_pallas(
            ente, tok_part, ent_type_ids, self.type_emb, self.fusion_w,
            self.fusion_b, self.ln_gamma, self.ln_beta).reshape(Bt, Te, H)

        # ----- candidate path (pure gather, no compute; stays bf16) -----
        cand_out = jnp.take(self.ent_emb, ent_candidates, axis=0)

        return tok_out, ent_out, cand_out


# ----------------------------------------------------------------------------
# Pure-JAX reference (erf-based gelu, same dtype round-trips) for a sanity check
# ----------------------------------------------------------------------------
def reference(mod, input_tok, input_tok_type, input_tok_pos, input_ent_tok,
              input_ent_tok_length, input_ent_mask_type, input_ent,
              input_ent_type, ent_candidates):
    f32 = jnp.float32
    g, b = mod.ln_gamma[0], mod.ln_beta[0]

    tok = (mod.word_emb[input_tok].astype(f32)
           + mod.pos_emb[input_tok_pos].astype(f32)
           + mod.type_emb[input_tok_type].astype(f32))
    tok = _layernorm(tok, g, b)

    etw = (mod.word_emb[input_ent_tok].astype(f32).sum(-2)
           / input_ent_tok_length.astype(f32)[..., None])
    etw = jnp.where((input_ent_mask_type != 0)[..., None],
                    mod.mask_emb[input_ent_mask_type].astype(f32), etw)
    tok_part = etw.astype(jnp.bfloat16)
    ente = mod.ent_emb[input_ent]
    x2 = jnp.concatenate([ente, tok_part], axis=-1)
    fused = jnp.dot(x2, mod.fusion_w, preferred_element_type=f32) + mod.fusion_b[0]
    ent = jax.nn.gelu(fused, approximate=False)   # erf-based == ACT2FN['gelu']
    ent = _layernorm(ent, g, b)
    ent = ent + mod.type_emb[input_ent_type].astype(f32)
    ent = _layernorm(ent, g, b)

    return tok, ent, mod.ent_emb[ent_candidates]


if __name__ == "__main__":
    key = jax.random.PRNGKey(0)
    kp, k1, k2, k3, k4, k5, k6, k7 = jax.random.split(key, 8)

    # H kept a multiple of 128 so kernel loads/stores are lane-dense.
    B, T_tok, T_ent, L, H, C = 2, 16, 8, 4, 128, 6
    VOCAB, ENT_VOCAB, MAX_POS, TYPE_VOCAB = 100, 50, 64, 3

    mod = TableHybridEmbeddingsPallas(kp, VOCAB, ENT_VOCAB, MAX_POS,
                                      TYPE_VOCAB, H)

    input_tok = jax.random.randint(k1, (B, T_tok), 1, VOCAB, dtype=jnp.int32)
    input_tok_pos = jnp.broadcast_to(jnp.arange(T_tok, dtype=jnp.int32), (B, T_tok))
    input_tok_type = jax.random.randint(k2, (B, T_tok), 0, TYPE_VOCAB, dtype=jnp.int32)

    input_ent_tok = jax.random.randint(k3, (B, T_ent, L), 0, VOCAB, dtype=jnp.int32)
    input_ent_tok_length = jnp.maximum(
        (input_ent_tok != 0).sum(-1), 1).astype(jnp.float32)
    input_ent_mask_type = jax.random.randint(k4, (B, T_ent), 0, 4, dtype=jnp.int32)
    input_ent = jax.random.randint(k5, (B, T_ent), 0, ENT_VOCAB, dtype=jnp.int32)
    input_ent_type = jax.random.randint(k6, (B, T_ent), 0, TYPE_VOCAB, dtype=jnp.int32)
    ent_candidates = jax.random.randint(k7, (B, C), 0, ENT_VOCAB, dtype=jnp.int32)

    tok_out, ent_out, cand_out = mod(input_tok, input_tok_type, input_tok_pos,
                                     input_ent_tok, input_ent_tok_length,
                                     input_ent_mask_type, input_ent,
                                     input_ent_type, ent_candidates)
    jax.block_until_ready((tok_out, ent_out, cand_out))

    tok_ref, ent_ref, cand_ref = reference(
        mod, input_tok, input_tok_type, input_tok_pos, input_ent_tok,
        input_ent_tok_length, input_ent_mask_type, input_ent, input_ent_type,
        ent_candidates)

    assert tok_out.shape == (B, T_tok, H) and ent_out.shape == (B, T_ent, H)
    assert cand_out.shape == (B, C, H)
    # kernel outputs are bf16 -> compare in f32 with bf16-rounding tolerance
    assert jnp.allclose(tok_out.astype(jnp.float32), tok_ref,
                        atol=2e-2, rtol=2e-2), "tok path mismatch"
    assert jnp.allclose(ent_out.astype(jnp.float32), ent_ref,
                        atol=2e-2, rtol=2e-2), "ent path mismatch"
    assert jnp.allclose(cand_out.astype(jnp.float32),
                        cand_ref.astype(jnp.float32), atol=1e-6), \
        "candidate path mismatch"

    print("KERNEL_OK")
</pallas_src>

<mosaic_0001>
module attributes {stable_mosaic.version = 11 : i64} {
  func.func @tok_kernel(%arg0: i32, %arg1: memref<32x128xbf16, #tpu.memory_space<vmem>>, %arg2: memref<32x1xi32, #tpu.memory_space<vmem>>, %arg3: memref<32x1xi32, #tpu.memory_space<vmem>>, %arg4: memref<64x128xbf16, #tpu.memory_space<vmem>>, %arg5: memref<3x128xbf16, #tpu.memory_space<vmem>>, %arg6: memref<1x128xf32, #tpu.memory_space<vmem>>, %arg7: memref<1x128xf32, #tpu.memory_space<vmem>>, %arg8: memref<32x128xbf16, #tpu.memory_space<vmem>>) attributes {dimension_semantics = [#tpu.dimension_semantics<parallel>], iteration_bounds = array<i64: 1>, scalar_prefetch = 0 : i64, scratch_operands = 0 : i64, tpu.core_type = #tpu.core_type<tc>, window_params = [{transform_indices = @transform_0, window_bounds = array<i64: 32, 128>}, {transform_indices = @transform_1, window_bounds = array<i64: 32, 1>}, {transform_indices = @transform_2, window_bounds = array<i64: 32, 1>}, {pipeline_mode = #tpu.pipeline_mode<synchronous>, transform_indices = @transform_3, window_bounds = array<i64: 64, 128>}, {pipeline_mode = #tpu.pipeline_mode<synchronous>, transform_indices = @transform_4, window_bounds = array<i64: 3, 128>}, {pipeline_mode = #tpu.pipeline_mode<synchronous>, transform_indices = @transform_5, window_bounds = array<i64: 1, 128>}, {pipeline_mode = #tpu.pipeline_mode<synchronous>, transform_indices = @transform_6, window_bounds = array<i64: 1, 128>}, {transform_indices = @transform_7, window_bounds = array<i64: 32, 128>}]} {
    %c0 = arith.constant 0 : index
    %c0_0 = arith.constant 0 : index
    %0 = vector.load %arg1[%c0, %c0_0] : memref<32x128xbf16, #tpu.memory_space<vmem>>, vector<32x128xbf16>
    %1 = arith.extf %0 : vector<32x128xbf16> to vector<32x128xf32>
    %c0_1 = arith.constant 0 : index
    %c0_2 = arith.constant 0 : index
    %2 = vector.load %arg2[%c0_1, %c0_2] : memref<32x1xi32, #tpu.memory_space<vmem>>, vector<32x1xi32>
    %c0_3 = arith.constant 0 : index
    %c0_4 = arith.constant 0 : index
    %3 = vector.load %arg4[%c0_3, %c0_4] : memref<64x128xbf16, #tpu.memory_space<vmem>>, vector<64x128xbf16>
    %4 = tpu.iota {dimensions = array<i32: 1>} : vector<32x64xi32>
    %5 = vector.broadcast %2 : vector<32x1xi32> to vector<32x64xi32>
    %6 = arith.cmpi eq, %5, %4 : vector<32x64xi32>
    %cst = arith.constant 1.000000e+00 : f32
    %cst_5 = arith.constant 0.000000e+00 : f32
    %7 = vector.broadcast %cst : f32 to vector<32x64xf32>
    %8 = vector.broadcast %cst_5 : f32 to vector<32x64xf32>
    %9 = arith.select %6, %7, %8 : vector<32x64xi1>, vector<32x64xf32>
    %10 = arith.truncf %9 : vector<32x64xf32> to vector<32x64xbf16>
    %cst_6 = arith.constant dense<0.000000e+00> : vector<32x128xf32>
    %11 = tpu.matmul %10, %3, %cst_6 {dimension_numbers = #tpu.dot_dimension_numbers<[1], [0], [0], [1], [0, 0, 1, 1], [], []>} : vector<32x64xbf16>, vector<64x128xbf16>, vector<32x128xf32> -> vector<32x128xf32>
    %12 = arith.addf %1, %11 : vector<32x128xf32>
    %c0_7 = arith.constant 0 : index
    %c0_8 = arith.constant 0 : index
    %13 = vector.load %arg3[%c0_7, %c0_8] : memref<32x1xi32, #tpu.memory_space<vmem>>, vector<32x1xi32>
    %c0_9 = arith.constant 0 : index
    %c0_10 = arith.constant 0 : index
    %14 = vector.load %arg5[%c0_9, %c0_10] : memref<3x128xbf16, #tpu.memory_space<vmem>>, vector<3x128xbf16>
    %15 = tpu.iota {dimensions = array<i32: 1>} : vector<32x3xi32>
    %16 = vector.broadcast %13 : vector<32x1xi32> to vector<32x3xi32>
    %17 = arith.cmpi eq, %16, %15 : vector<32x3xi32>
    %cst_11 = arith.constant 1.000000e+00 : f32
    %cst_12 = arith.constant 0.000000e+00 : f32
    %18 = vector.broadcast %cst_11 : f32 to vector<32x3xf32>
    %19 = vector.broadcast %cst_12 : f32 to vector<32x3xf32>
    %20 = arith.select %17, %18, %19 : vector<32x3xi1>, vector<32x3xf32>
    %21 = arith.truncf %20 : vector<32x3xf32> to vector<32x3xbf16>
    %cst_13 = arith.constant dense<0.000000e+00> : vector<32x128xf32>
    %22 = tpu.matmul %21, %14, %cst_13 {dimension_numbers = #tpu.dot_dimension_numbers<[1], [0], [0], [1], [0, 0, 1, 1], [], []>} : vector<32x3xbf16>, vector<3x128xbf16>, vector<32x128xf32> -> vector<32x128xf32>
    %23 = arith.addf %12, %22 : vector<32x128xf32>
    %c0_14 = arith.constant 0 : index
    %c0_15 = arith.constant 0 : index
    %24 = vector.load %arg6[%c0_14, %c0_15] : memref<1x128xf32, #tpu.memory_space<vmem>>, vector<1x128xf32>
    %c0_16 = arith.constant 0 : index
    %c0_17 = arith.constant 0 : index
    %25 = vector.load %arg7[%c0_16, %c0_17] : memref<1x128xf32, #tpu.memory_space<vmem>>, vector<1x128xf32>
    %cst_18 = arith.constant dense<0.000000e+00> : vector<32xf32>
    %26 = vector.multi_reduction <add>, %23, %cst_18 [1] : vector<32x128xf32> to vector<32xf32>
    %27 = vector.shape_cast %26 : vector<32xf32> to vector<32x1xf32>
    %cst_19 = arith.constant 1.280000e+02 : f32
    %28 = vector.broadcast %cst_19 : f32 to vector<32x1xf32>
    %29 = arith.divf %27, %28 : vector<32x1xf32>
    %30 = vector.broadcast %29 : vector<32x1xf32> to vector<32x128xf32>
    %31 = arith.subf %23, %30 : vector<32x128xf32>
    %32 = arith.mulf %31, %31 : vector<32x128xf32>
    %cst_20 = arith.constant dense<0.000000e+00> : vector<32xf32>
    %33 = vector.multi_reduction <add>, %32, %cst_20 [1] : vector<32x128xf32> to vector<32xf32>
    %34 = vector.shape_cast %33 : vector<32xf32> to vector<32x1xf32>
    %cst_21 = arith.constant 1.280000e+02 : f32
    %35 = vector.broadcast %cst_21 : f32 to vector<32x1xf32>
    %36 = arith.divf %34, %35 : vector<32x1xf32>
    %37 = vector.broadcast %29 : vector<32x1xf32> to vector<32x128xf32>
    %38 = arith.subf %23, %37 : vector<32x128xf32>
    %cst_22 = arith.constant 9.99999996E-13 : f32
    %39 = vector.broadcast %cst_22 : f32 to vector<32x1xf32>
    %40 = arith.addf %36, %39 : vector<32x1xf32>
    %41 = math.rsqrt %40 : vector<32x1xf32>
    %42 = vector.broadcast %41 : vector<32x1xf32> to vector<32x128xf32>
    %43 = arith.mulf %38, %42 : vector<32x128xf32>
    %44 = vector.broadcast %24 : vector<1x128xf32> to vector<32x128xf32>
    %45 = arith.mulf %43, %44 : vector<32x128xf32>
    %46 = vector.broadcast %25 : vector<1x128xf32> to vector<32x128xf32>
    %47 = arith.addf %45, %46 : vector<32x128xf32>
    %48 = arith.truncf %47 : vector<32x128xf32> to vector<32x128xbf16>
    %c0_23 = arith.constant 0 : index
    %c0_24 = arith.constant 0 : index
    %49 = vector.load %arg8[%c0_23, %c0_24] : memref<32x128xbf16, #tpu.memory_space<vmem>>, vector<32x128xbf16>
    tpu.vector_store %arg8[%c0_23, %c0_24], %48 {strides = array<i32>} : memref<32x128xbf16, #tpu.memory_space<vmem>>, vector<32x128xbf16>,
    return
  }
  func.func @transform_0(%arg0: i32) -> (i32, i32) {
    %c0_i32 = arith.constant 0 : i32
    %c0_i32_0 = arith.constant 0 : i32
    return %arg0, %c0_i32 : i32, i32
  }
  func.func @transform_1(%arg0: i32) -> (i32, i32) {
    %c0_i32 = arith.constant 0 : i32
    %c0_i32_0 = arith.constant 0 : i32
    return %arg0, %c0_i32 : i32, i32
  }
  func.func @transform_2(%arg0: i32) -> (i32, i32) {
    %c0_i32 = arith.constant 0 : i32
    %c0_i32_0 = arith.constant 0 : i32
    return %arg0, %c0_i32 : i32, i32
  }
  func.func @transform_3(%arg0: i32) -> (i32, i32) {
    %c0_i32 = arith.constant 0 : i32
    %c0_i32_0 = arith.constant 0 : i32
    %c0_i32_1 = arith.constant 0 : i32
    return %c0_i32, %c0_i32_0 : i32, i32
  }
  func.func @transform_4(%arg0: i32) -> (i32, i32) {
    %c0_i32 = arith.constant 0 : i32
    %c0_i32_0 = arith.constant 0 : i32
    %c0_i32_1 = arith.constant 0 : i32
    return %c0_i32, %c0_i32_0 : i32, i32
  }
  func.func @transform_5(%arg0: i32) -> (i32, i32) {
    %c0_i32 = arith.constant 0 : i32
    %c0_i32_0 = arith.constant 0 : i32
    %c0_i32_1 = arith.constant 0 : i32
    return %c0_i32, %c0_i32_0 : i32, i32
  }
  func.func @transform_6(%arg0: i32) -> (i32, i32) {
    %c0_i32 = arith.constant 0 : i32
    %c0_i32_0 = arith.constant 0 : i32
    %c0_i32_1 = arith.constant 0 : i32
    return %c0_i32, %c0_i32_0 : i32, i32
  }
  func.func @transform_7(%arg0: i32) -> (i32, i32) {
    %c0_i32 = arith.constant 0 : i32
    %c0_i32_0 = arith.constant 0 : i32
    return %arg0, %c0_i32 : i32, i32
  }
}

</mosaic_0001>

<bundles_post_ra>
// kernel: tpu_custom_call.1
= control target key start
LH: loop header
LB: loop body
LE: loop exit
PB: predicated region body
PF: predicated region fallthrough
CT: control target
= control target key end

     0   :  { %v416_v2 = vmov 0   ;;  %s536_s0 = inlined_call_operand.vmem [shape: bf16[32,128], index: 0, kind: input, shape index: {}]   ;;  %s537_s1 = inlined_call_operand.vmem [shape: s32[32,1], index: 1, kind: input, shape index: {}]   ;;  %s538_s2 = inlined_call_operand.vmem [shape: s32[32,1], index: 2, kind: input, shape index: {}]   ;;  %s539_s3 = inlined_call_operand.vmem [shape: bf16[64,128], index: 3, kind: input, shape index: {}]   ;;  %s540_s4 = inlined_call_operand.vmem [shape: bf16[3,128], index: 4, kind: input, shape index: {}]   ;;  %s541_s5 = inlined_call_operand.vmem [shape: f32[1,128], index: 5, kind: input, shape index: {}]   ;;  %s542_s6 = inlined_call_operand.vmem [shape: f32[1,128], index: 6, kind: input, shape index: {}]   ;;  %s543_s7 = inlined_call_operand.hbm [shape: bf16[32,128], index: 7, kind: output, shape index: {}]  }
   0x1   :  { %v128_v0 = vld [vmem:[%s538_s2 + $0x10] sm:$0xff]  ;;  %376 = vset.pattern.permute.xlu1 %v416_v2  ;;  %375 = vset.pattern.permute.xlu0 %v416_v2  ;;  %v36_v3 = vld [vmem:[%s537_s1] sm:$0xff]  ;;  %v342_v4 = vld [vmem:[%s539_s3 + $0x18] sm:$0xff] }
   0x2   :  { %v38_v1 = vld [vmem:[%s537_s1 + $0x10] sm:$0xff]  ;;  %138 = vperm.xlu1 %376, %v128_v0   ;;  %377 = vset.pattern.permute.xlu2 %v416_v2 }
   0x3   :  { %57 = vperm.xlu0 %375, %v38_v1  }
   0x4   :  { %12 = vsyncpa [#allocation3], 0  ;;  %51 = vperm.xlu2 %377, %v36_v3   ;;  %107 = vmatpush.bf16.msra.mxu0 %v342_v4  ;;  %v129_v5 = vld [vmem:[%s538_s2 + $0x18] sm:$0xff]  ;;  %v37_v7 = vld [vmem:[%s537_s1 + $0x8] sm:$0xff]  ;;  %vm160_vm0 = vcmask 1040384   ;;  %vm161_vm1 = vcmask 1041408   ;;  %v48_v15 = vlaneseq }
   0x5   :  { %363 = vmatpush.bf16.msra.mxu2 %v342_v4  ;;  %v39_v6 = vld [vmem:[%s537_s1 + $0x18] sm:$0xff]  ;;  %v127_v8 = vld [vmem:[%s538_s2 + $0x8] sm:$0xff]  ;;  %v126_v9 = vld [vmem:[%s538_s2] sm:$0xff]  ;;  %v417_v13 = vmov 65535   ;;  %v418_v21 = vmov 0.0   ;;  %vm96_vm4 = vcmask 523264  }
   0x6   :  { %v341_v10 = vld [vmem:[%s539_s3 + $0x10] sm:$0xff]  ;;  %v340_v11 = vld [vmem:[%s539_s3 + $0x8] sm:$0xff]  ;;  %v339_v12 = vld [vmem:[%s539_s3] sm:$0xff]  ;;  %v162_v14 = vsel %vm160_vm0, 4294967295, %v417_v13  ;;  %v49_v20 = vand.u32 127, %v48_v15  ;;  %vm153_vm9 = vcmask 23552  }
   0x7   :  { %v130_v16 = vld [vmem:[%s540_s4] sm:$0x3]  ;;  %v163_v17 = vsel %vm161_vm1, %v162_v14, 0  ;;  %v361_v42 = vld [vmem:[%s536_s0 + $0x8] sm:$0xff]   ;;  %v419_v63 = vmov 128.0   ;;  %s307_s10 = sshll.u32 %s543_s7, 4  ;;  %s308_s10 = int_to_ptr.hbm [resolvable:$true] %s307_s10 }
   0x8   :  { %108 = vmatpush.bf16.msra.mxu0 %v341_v10  ;;  %v165_v18 = vand.u32 %v163_v17, %v130_v16  ;;  %v344_v41 = vld [vmem:[%s536_s0] sm:$0xff]   ;;  %v349_v45 = vunpack.c.l.bf16 %v361_v42  ;;  %v350_v54 = vunpack.c.h.bf16 %v361_v42  ;;  %380 = vrcp.f32 %v419_v63  ;;  %s422_s11 = smov 4  }
   0x9   :  { %364 = vmatpush.bf16.msra.mxu2 %v341_v10  ;;  %v345_v44 = vunpack.c.l.bf16 %v344_v41  ;;  %v346_v53 = vunpack.c.h.bf16 %v344_v41 }
   0xa   :  { %141 = vperm.xlu1 %376, %v129_v5   ;;  %367 = vmatpush.bf16.msra.mxu3 %v165_v18 }
   0xb   :  { %60 = vperm.xlu0 %375, %v39_v6   ;;  %174 = vmatpush.bf16.msra.mxu1 %v165_v18 }
   0xc   :  { %54 = vperm.xlu2 %377, %v37_v7   ;;  %109 = vmatpush.bf16.msra.mxu0 %v340_v11 }
   0xd   :  { %365 = vmatpush.bf16.msra.mxu2 %v340_v11 }
   0xe   :  { %v381_v0 = vpop.eup %380 }
   0xf   :  { %v201_v1 = vmul.f32 128.0, %v381_v0  ;;  %vm205_vm12 = vweird.f32 %v381_v0 }
  0x10   :  { %110 = vmatpush.bf16.msra.mxu0 %v339_v12 }
  0x11   :  { %366 = vmatpush.bf16.msra.mxu2 %v339_v12  ;;  %v202_v2 = vsub.f32 1.0, %v201_v1 }
  0x12   :  { %135 = vperm.xlu1 %376, %v127_v8  }
  0x13   :  { %132 = vperm.xlu0 %375, %v126_v9   ;;  %v203_v3 = vmul.f32 %v381_v0, %v202_v2 }
  0x15   :  { %v204_v4 = vadd.f32 %v381_v0, %v203_v3 }
  0x17   :  { %v206_v5 = vsel %vm205_vm12, %v381_v0, %v204_v4  ;;  %v379_v0 = vld [vmem:[%s542_s6] ss:$0 sm:$0xff]  ;;  %s421_s6 = smov 64  }
  0x5e   :  { %v52_v19 = vpop.permute.xlu2 %51 }
  0x5f   :  { %vm62_vm2 = vcmp.eq.s32.totalorder %v52_v19, %v49_v20 }
  0x60   :  { %v66_v22 = vsel %vm62_vm2, 1.0, %v418_v21 }
  0x66   :  { %v55_v23 = vpop.permute.xlu2 %54 }
  0x67   :  { %vm63_vm3 = vcmp.eq.s32.totalorder %v55_v23, %v49_v20 }
  0x68   :  { %v67_v24 = vsel %vm63_vm3, 1.0, %v418_v21 }
  0x69   :  { %v70_v25 = vpack.c.bf16 %v67_v24, %v66_v22 }
  0x6b   :  { %335 = vmatmul.msk.bf16.vlgmr.msra.gmra.mxu0 %vm96_vm4, %v70_v25 }
  0x74   :  { %v139_v26 = vpop.permute.xlu1 %138 }
  0x75   :  { %v58_v27 = vpop.permute.xlu0 %57  ;;  %vm145_vm5 = vcmp.eq.s32.totalorder %v139_v26, %v49_v20 }
  0x76   :  { %vm64_vm6 = vcmp.eq.s32.totalorder %v58_v27, %v49_v20  ;;  %v149_v30 = vsel %vm145_vm5, 1.0, %v418_v21 }
  0x77   :  { %v68_v31 = vsel %vm64_vm6, 1.0, %v418_v21 }
  0x7c   :  { %v142_v28 = vpop.permute.xlu1 %141 }
  0x7d   :  { %v61_v29 = vpop.permute.xlu0 %60  ;;  %vm146_vm7 = vcmp.eq.s32.totalorder %v142_v28, %v49_v20 }
  0x7e   :  { %vm65_vm8 = vcmp.eq.s32.totalorder %v61_v29, %v49_v20  ;;  %v150_v32 = vsel %vm146_vm7, 1.0, %v418_v21 }
  0x7f   :  { %v69_v33 = vsel %vm65_vm8, 1.0, %v418_v21  ;;  %v152_v34 = vpack.c.bf16 %v150_v32, %v149_v30 }
  0x80   :  { %v71_v35 = vpack.c.bf16 %v69_v33, %v68_v31 }
  0x81   :  { %338 = vmatmul.msk.bf16.vlgmr.msra.gmra.mxu3 %vm153_vm9, %v152_v34 }
  0x82   :  { %336 = vmatmul.msk.bf16.vlgmr.msra.gmra.mxu2 %vm96_vm4, %v71_v35 }
  0x84   :  { %v136_v36 = vpop.permute.xlu1 %135 }
  0x85   :  { %v133_v37 = vpop.permute.xlu0 %132  ;;  %vm144_vm10 = vcmp.eq.s32.totalorder %v136_v36, %v49_v20 }
  0x86   :  { %vm143_vm11 = vcmp.eq.s32.totalorder %v133_v37, %v49_v20  ;;  %v148_v38 = vsel %vm144_vm10, 1.0, %v418_v21 }
  0x87   :  { %v147_v39 = vsel %vm143_vm11, 1.0, %v418_v21 }
  0x88   :  { %v151_v40 = vpack.c.bf16 %v148_v38, %v147_v39 }
  0x8a   :  { %337 = vmatmul.msk.bf16.vlgmr.msra.gmra.mxu1 %vm153_vm9, %v151_v40 }
  0xe8   :  { %v112_v43 = vpop.f32.mrf.mxu0 }
  0xe9   :  { %v122_v48 = vadd.f32 %v345_v44, %v112_v43 }
  0xf0   :  { %v114_v55 = vpop.f32.mrf.mxu0 }
  0xf1   :  { %v123_v57 = vadd.f32 %v346_v53, %v114_v55 }
 0x104   :  { %v181_v47 = vpop.f32.mrf.mxu3 }
 0x105   :  { %v117_v46 = vpop.f32.mrf.mxu2 }
 0x106   :  { %v124_v49 = vadd.f32 %v349_v45, %v117_v46 }
 0x107   :  { %v176_v50 = vpop.f32.mrf.mxu1 }
 0x108   :  { %v188_v51 = vadd.f32 %v181_v47, %v124_v49  ;;  %v186_v52 = vadd.f32 %v176_v50, %v122_v48 }
 0x10a   :  { %196 = vadd.xlane.f32.xlu1 %v188_v51  ;;  %192 = vadd.xlane.f32.xlu2 %v186_v52 }
 0x10c   :  { %v183_v59 = vpop.f32.mrf.mxu3 }
 0x10d   :  { %v119_v56 = vpop.f32.mrf.mxu2 }
 0x10e   :  { %v125_v58 = vadd.f32 %v350_v54, %v119_v56 }
 0x10f   :  { %v178_v60 = vpop.f32.mrf.mxu1 }
 0x110   :  { %v189_v61 = vadd.f32 %v183_v59, %v125_v58  ;;  %v187_v62 = vadd.f32 %v178_v60, %v123_v57  ;;  %v378_v57 = vld [vmem:[%s541_s5] ss:$0 sm:$0xff]  ;;  %s420_s5 = smov [#allocation2]  }
 0x111   :  { %s305_s30 = sshll.u32 %s420_s5, 4  ;;  %s306_s30 = int_to_ptr.vmem [resolvable:$true] %s305_s30 }
 0x112   :  { %194 = vadd.xlane.f32.xlu0 %v187_v62  ;;  %198 = vadd.xlane.f32.xlu2 %v189_v61 }
 0x17d   :  { %v197_v6 = vpop.xlane.xlu1 %196  ;;  %v193_v7 = vpop.xlane.xlu2 %192 }
 0x17e   :  { %v209_v8 = vmul.f32 %v206_v5, %v197_v6  ;;  %v207_v9 = vmul.f32 %v206_v5, %v193_v7 }
 0x180   :  { %v512_v10 = vsub.f32 %v188_v51, %v209_v8  ;;  %v211_v11 = vsub.f32 %v186_v52, %v207_v9 }
 0x182   :  { %v217_v12 = vmul.f32 %v512_v10, %v512_v10  ;;  %v215_v13 = vmul.f32 %v211_v11, %v211_v11 }
 0x184   :  { %223 = vadd.xlane.f32.xlu1 %v217_v12  ;;  %219 = vadd.xlane.f32.xlu2 %v215_v13 }
 0x185   :  { %v195_v14 = vpop.xlane.xlu0 %194  ;;  %v199_v15 = vpop.xlane.xlu2 %198 }
 0x186   :  { %v208_v16 = vmul.f32 %v206_v5, %v195_v14  ;;  %v210_v17 = vmul.f32 %v206_v5, %v199_v15 }
 0x188   :  { %v516_v18 = vsub.f32 %v187_v62, %v208_v16  ;;  %v518_v19 = vsub.f32 %v189_v61, %v210_v17 }
 0x18a   :  { %v216_v20 = vmul.f32 %v516_v18, %v516_v18  ;;  %v218_v21 = vmul.f32 %v518_v19, %v518_v19 }
 0x18c   :  { %221 = vadd.xlane.f32.xlu0 %v216_v20  ;;  %225 = vadd.xlane.f32.xlu2 %v218_v21 }
 0x1f7   :  { %v224_v22 = vpop.xlane.xlu1 %223  ;;  %v220_v23 = vpop.xlane.xlu2 %219 }
 0x1f8   :  { %v229_v24 = vmul.f32 %v224_v22, %v206_v5  ;;  %v227_v25 = vmul.f32 %v220_v23, %v206_v5 }
 0x1fa   :  { %v233_v26 = vadd.f32 1e-12, %v229_v24  ;;  %v231_v27 = vadd.f32 1e-12, %v227_v25 }
 0x1fc   :  { %382 = vrsqrt.f32 %v233_v26  ;;  %vm241_vm15 = vweird.f32 %v231_v27  ;;  %vm261_vm0 = vweird.f32 %v233_v26 }
 0x1fd   :  { %384 = vrsqrt.f32 %v231_v27 }
 0x1ff   :  { %v222_v28 = vpop.xlane.xlu0 %221  ;;  %v226_v29 = vpop.xlane.xlu2 %225 }
 0x200   :  { %v228_v30 = vmul.f32 %v222_v28, %v206_v5  ;;  %v230_v31 = vmul.f32 %v226_v29, %v206_v5 }
 0x202   :  { %v383_v32 = vpop.eup %382  ;;  %v232_v33 = vadd.f32 1e-12, %v228_v30  ;;  %v234_v34 = vadd.f32 1e-12, %v230_v31 }
 0x203   :  { %v385_v35 = vpop.eup %384  ;;  %v256_v36 = vmul.f32 %v383_v32, %v233_v26  ;;  %vm262_vm14 = vweird.f32 %v383_v32 }
 0x204   :  { %v236_v37 = vmul.f32 %v385_v35, %v231_v27  ;;  %386 = vrsqrt.f32 %v232_v33  ;;  %vm242_vm13 = vweird.f32 %v385_v35  ;;  %vm263_vm2 = vmor %vm261_vm0, %vm262_vm14  ;;  %vm251_vm5 = vweird.f32 %v232_v33 }
 0x205   :  { %v257_v38 = vmul.f32 %v383_v32, %v256_v36  ;;  %388 = vrsqrt.f32 %v234_v34  ;;  %vm243_vm1 = vmor %vm241_vm15, %vm242_vm13  ;;  %vm271_vm7 = vweird.f32 %v234_v34 }
 0x206   :  { %v237_v39 = vmul.f32 %v385_v35, %v236_v37 }
 0x207   :  { %v258_v40 = vmul.f32 0.5, %v257_v38 }
 0x208   :  { %v238_v41 = vmul.f32 0.5, %v237_v39 }
 0x209   :  { %v259_v42 = vsub.f32 1.5, %v258_v40 }
 0x20a   :  { %v387_v43 = vpop.eup %386  ;;  %v239_v44 = vsub.f32 1.5, %v238_v41 }
 0x20b   :  { %v389_v45 = vpop.eup %388  ;;  %v246_v46 = vmul.f32 %v387_v43, %v232_v33  ;;  %v260_v47 = vmul.f32 %v383_v32, %v259_v42  ;;  %vm252_vm3 = vweird.f32 %v387_v43 }
 0x20c   :  { %v240_v48 = vmul.f32 %v385_v35, %v239_v44  ;;  %v266_v49 = vmul.f32 %v389_v45, %v234_v34  ;;  %vm272_vm4 = vweird.f32 %v389_v45  ;;  %vm253_vm6 = vmor %vm251_vm5, %vm252_vm3 }
 0x20d   :  { %v247_v50 = vmul.f32 %v387_v43, %v246_v46  ;;  %v264_v54 = vsel %vm263_vm2, %v383_v32, %v260_v47  ;;  %vm273_vm8 = vmor %vm271_vm7, %vm272_vm4 }
 0x20e   :  { %v267_v51 = vmul.f32 %v389_v45, %v266_v49  ;;  %v244_v52 = vsel %vm243_vm1, %v385_v35, %v240_v48  ;;  %v277_v60 = vmul.f32 %v264_v54, %v512_v10 }
 0x20f   :  { %v248_v53 = vmul.f32 0.5, %v247_v50  ;;  %v275_v58 = vmul.f32 %v244_v52, %v211_v11 }
 0x210   :  { %v268_v55 = vmul.f32 0.5, %v267_v51  ;;  %v284_v4 = vmul.f32 %v378_v57, %v277_v60 }
 0x211   :  { %v249_v56 = vsub.f32 1.5, %v248_v53  ;;  %v282_v1 = vmul.f32 %v378_v57, %v275_v58 }
 0x212   :  { %v269_v59 = vsub.f32 1.5, %v268_v55  ;;  %v291_v10 = vadd.f32 %v379_v0, %v284_v4 }
 0x213   :  { %v250_v61 = vmul.f32 %v387_v43, %v249_v56  ;;  %v289_v8 = vadd.f32 %v379_v0, %v282_v1 }
 0x214   :  { %v270_v62 = vmul.f32 %v389_v45, %v269_v59 }
 0x215   :  { %v254_v63 = vsel %vm253_vm6, %v387_v43, %v250_v61 }
 0x216   :  { %v276_v2 = vmul.f32 %v254_v63, %v516_v18  ;;  %v274_v3 = vsel %vm273_vm8, %v389_v45, %v270_v62 }
 0x217   :  { %v278_v5 = vmul.f32 %v274_v3, %v518_v19 }
 0x218   :  { %v283_v6 = vmul.f32 %v378_v57, %v276_v2 }
 0x219   :  { %v285_v7 = vmul.f32 %v378_v57, %v278_v5 }
 0x21a   :  { %v290_v9 = vadd.f32 %v379_v0, %v283_v6 }
 0x21b   :  { %v292_v11 = vadd.f32 %v379_v0, %v285_v7 }
 0x21c   :  { %v354_v12 = vpack.c.bf16 %v290_v9, %v289_v8 }
 0x21d   :  { %v359_v13 = vpack.c.bf16 %v292_v11, %v291_v10 }
 0x21e   :  { %355 = vst [vmem:[#allocation2] sm:$0xff] %v354_v12  }
 0x21f   :  { %362 = vst [vmem:[#allocation2 + $0x8] sm:$0xff] %v359_v13  }
 0x220   :  { %313 = dma.vmem_to_hbm [thread:$0]  %s306_s30, 256, %s308_s10, [#allocation3], %s421_s6, %s421_s6, %s422_s11  }
 0x221   :  { %414 = dma.done.wait [#allocation3], 256  }
 0x222   :  { %415 = vsyncadd [#allocation3], 4294967040 }
 0x223   :  { %318 = vsyncpa [#allocation3], 1 }

</bundles_post_ra>
